<compile_context>
chip_gen: v5e
topology: v5e:2x2
jax: 0.10.0
libtpu: 0.0.40
codegen_flags: <defaults>
</compile_context>

<pallas_src>
import jax
import jax.numpy as jnp
from jax.experimental import pallas as pl
from jax.experimental.pallas import tpu as pltpu

_LANES = 128
_TARGET_BLOCK_BYTES = 1 << 20  # ~1 MiB per block (per array)


def _mish_kernel(x_ref, o_ref):
    x = x_ref[...]
    xf = x.astype(jnp.float32)
    # softplus with the same numerical guard PyTorch uses (threshold=20):
    # softplus(x) = log1p(exp(x)) for x <= 20, x otherwise.
    sp = jnp.where(xf > 20.0, xf, jnp.log1p(jnp.exp(jnp.minimum(xf, 20.0))))
    o_ref[...] = (xf * jnp.tanh(sp)).astype(o_ref.dtype)


def _sublane_multiple(dtype):
    # Whole packed vregs: f32 -> 8, bf16 -> 16, int8/fp8 -> 32 sublane rows.
    return max(8, 32 // jnp.dtype(dtype).itemsize)


def _pick_width(n):
    # Largest lane-dense width (multiple of 128) that exactly divides n.
    for w in (4096, 2048, 1024, 512, 256, 128):
        if n % w == 0:
            return w
    return None


def _mish_2d(x2d):
    rows, width = x2d.shape
    dtype = x2d.dtype
    itemsize = jnp.dtype(dtype).itemsize
    sub = _sublane_multiple(dtype)

    tile_rows = (_TARGET_BLOCK_BYTES // (width * itemsize)) // sub * sub
    tile_rows = max(sub, tile_rows)
    if tile_rows >= rows:
        tile_rows = rows  # full-extent block along rows is always legal

    grid = (pl.cdiv(rows, tile_rows),)  # partial last block masked by Pallas
    return pl.pallas_call(
        _mish_kernel,
        out_shape=jax.ShapeDtypeStruct((rows, width), dtype),
        grid_spec=pltpu.PrefetchScalarGridSpec(
            num_scalar_prefetch=0,
            grid=grid,
            in_specs=[pl.BlockSpec((tile_rows, width), lambda i: (i, 0))],
            out_specs=pl.BlockSpec((tile_rows, width), lambda i: (i, 0)),
        ),
        compiler_params=pltpu.CompilerParams(
            dimension_semantics=("parallel",)),
    )(x2d)


def mish(x):
    """Apply Mish elementwise. x: any shape (e.g. NCHW), any float dtype."""
    orig_shape = x.shape
    n = x.size

    w = _pick_width(n)
    if w is not None:
        # Fast path: pure reshape (no extra HBM traffic) into a lane-dense slab.
        y = _mish_2d(jnp.ravel(x).reshape(n // w, w))
        return y.reshape(orig_shape)

    # Fallback (n not a multiple of 128): pad only up to the next lane row.
    n_pad = pl.cdiv(n, _LANES) * _LANES
    x_flat = jnp.pad(jnp.ravel(x), (0, n_pad - n))
    y = _mish_2d(x_flat.reshape(n_pad // _LANES, _LANES))
    return y.reshape(-1)[:n].reshape(orig_shape)


def _mish_ref(x):
    xf = x.astype(jnp.float32)
    sp = jnp.where(xf > 20.0, xf, jnp.log1p(jnp.exp(jnp.minimum(xf, 20.0))))
    return (xf * jnp.tanh(sp)).astype(x.dtype)


if __name__ == "__main__":
    key = jax.random.PRNGKey(0)
    x = jax.random.normal(key, (2, 4, 16, 16), dtype=jnp.float32) * 3.0

    y = mish(x)
    jax.block_until_ready(y)

    y_ref = _mish_ref(x)
    assert y.shape == x.shape and y.dtype == x.dtype
    assert jnp.allclose(y, y_ref, atol=1e-5, rtol=1e-5)

    # Exercise the non-multiple-of-128 fallback path as well.
    x2 = jax.random.normal(jax.random.PRNGKey(1), (3, 5, 7), dtype=jnp.float32) * 3.0
    y2 = mish(x2)
    jax.block_until_ready(y2)
    assert y2.shape == x2.shape and y2.dtype == x2.dtype
    assert jnp.allclose(y2, _mish_ref(x2), atol=1e-5, rtol=1e-5)

    print("KERNEL_OK")
</pallas_src>

<mosaic_0001>
module attributes {stable_mosaic.version = 11 : i64} {
  func.func @_mish_kernel(%arg0: i32, %arg1: memref<1x2048xf32, #tpu.memory_space<vmem>>, %arg2: memref<1x2048xf32, #tpu.memory_space<vmem>>) attributes {dimension_semantics = [#tpu.dimension_semantics<parallel>], iteration_bounds = array<i64: 1>, scalar_prefetch = 0 : i64, scratch_operands = 0 : i64, tpu.core_type = #tpu.core_type<tc>, window_params = [{transform_indices = @transform_0, window_bounds = array<i64: 1, 2048>}, {transform_indices = @transform_1, window_bounds = array<i64: 1, 2048>}]} {
    %c0 = arith.constant 0 : index
    %c0_0 = arith.constant 0 : index
    %0 = vector.load %arg1[%c0, %c0_0] : memref<1x2048xf32, #tpu.memory_space<vmem>>, vector<1x2048xf32>
    %cst = arith.constant 2.000000e+01 : f32
    %1 = vector.broadcast %cst : f32 to vector<1x2048xf32>
    %2 = arith.cmpf ogt, %0, %1 : vector<1x2048xf32>
    %cst_1 = arith.constant 2.000000e+01 : f32
    %3 = vector.broadcast %cst_1 : f32 to vector<1x2048xf32>
    %4 = arith.minimumf %0, %3 : vector<1x2048xf32>
    %5 = math.exp %4 : vector<1x2048xf32>
    %6 = math.log1p %5 : vector<1x2048xf32>
    %7 = arith.select %2, %0, %6 : vector<1x2048xi1>, vector<1x2048xf32>
    %8 = math.tanh %7 : vector<1x2048xf32>
    %9 = arith.mulf %0, %8 : vector<1x2048xf32>
    %c0_2 = arith.constant 0 : index
    %c0_3 = arith.constant 0 : index
    %10 = vector.load %arg2[%c0_2, %c0_3] : memref<1x2048xf32, #tpu.memory_space<vmem>>, vector<1x2048xf32>
    tpu.vector_store %arg2[%c0_2, %c0_3], %9 {strides = array<i32>} : memref<1x2048xf32, #tpu.memory_space<vmem>>, vector<1x2048xf32>,
    return
  }
  func.func @transform_0(%arg0: i32) -> (i32, i32) {
    %c0_i32 = arith.constant 0 : i32
    %c0_i32_0 = arith.constant 0 : i32
    return %arg0, %c0_i32 : i32, i32
  }
  func.func @transform_1(%arg0: i32) -> (i32, i32) {
    %c0_i32 = arith.constant 0 : i32
    %c0_i32_0 = arith.constant 0 : i32
    return %arg0, %c0_i32 : i32, i32
  }
}

</mosaic_0001>

<bundles_post_ra>
// kernel: tpu_custom_call.1
= control target key start
LH: loop header
LB: loop body
LE: loop exit
PB: predicated region body
PF: predicated region fallthrough
CT: control target
= control target key end

     0   :  { %6 = vsyncpa [#allocation3], 0  ;;  %s160_s0 = inlined_call_operand.hbm [shape: f32[1,2048], index: 0, kind: input, shape index: {}]   ;;  %s161_s1 = inlined_call_operand.hbm [shape: f32[1,2048], index: 1, kind: output, shape index: {}]  }
   0x1   :  { %7 = vsyncpa [#allocation4], 0  ;;  %s13_s8 = sshll.u32 %s160_s0, 4  ;;  %s142_s9 = smov [#allocation2]   ;;  %s14_s8 = int_to_ptr.hbm [resolvable:$true] %s13_s8 }
   0x2   :  { %s15_s10 = sshll.u32 %s142_s9, 4  ;;  %s16_s10 = int_to_ptr.vmem [resolvable:$true] %s15_s10 }
   0x3   :  { %18 = dma.hbm_to_vmem [thread:$0]  %s14_s8, 256, %s16_s10, [#allocation3]  }
   0x4   :  { %138 = dma.done.wait [#allocation3], 256  }
   0x5   :  { %139 = vsyncadd [#allocation3], 4294967040  ;;  %v23_v0 = vld [vmem:[#allocation2] sm:$0xff]  ;;  %v24_v1 = vld [vmem:[#allocation2 + $0x8] sm:$0xff]  ;;  %s143_s0 = smov [#allocation5]   ;;  %s66_s14 = sshll.u32 %s161_s1, 4  ;;  %s67_s14 = int_to_ptr.hbm [resolvable:$true] %s66_s14 }
   0x6   :  { %v27_v2 = vmin.f32 %v23_v0, 20.0  ;;  %v28_v3 = vmin.f32 %v24_v1, 20.0  ;;  %vm25_vm1 = vcmp.gt.f32.partialorder %v23_v0, 20.0  ;;  %vm26_vm3 = vcmp.gt.f32.partialorder %v24_v1, 20.0  ;;  %s64_s11 = sshll.u32 %s143_s0, 4  ;;  %s65_s11 = int_to_ptr.vmem [resolvable:$true] %s64_s11 }
   0x8   :  { %v29_v4 = vmul.f32 1.442695, %v27_v2  ;;  %v31_v5 = vmul.f32 1.442695, %v28_v3 }
   0xa   :  { %78 = vpow2.f32 %v29_v4 }
   0xb   :  { %80 = vpow2.f32 %v31_v5 }
  0x10   :  { %v79_v6 = vpop.eup %78 }
  0x11   :  { %v81_v7 = vpop.eup %80  ;;  %v33_v8 = vadd.f32 1.0, %v79_v6  ;;  %v36_v9 = vmul.f32 -0.5, %v79_v6  ;;  %v39_v13 = vand.u32 2147483647, %v79_v6 }
  0x12   :  { %v42_v10 = vadd.f32 1.0, %v81_v7  ;;  %v45_v11 = vmul.f32 -0.5, %v81_v7  ;;  %v48_v15 = vand.u32 2147483647, %v81_v7 }
  0x13   :  { %82 = vlog2.f32 %v33_v8  ;;  %v37_v12 = vadd.f32 1.0, %v36_v9  ;;  %vm40_vm0 = vcmp.lt.f32.partialorder %v39_v13, 0.0004427343 }
  0x14   :  { %84 = vlog2.f32 %v42_v10  ;;  %v46_v14 = vadd.f32 1.0, %v45_v11  ;;  %vm49_vm2 = vcmp.lt.f32.partialorder %v48_v15, 0.0004427343 }
  0x15   :  { %v38_v16 = vmul.f32 %v79_v6, %v37_v12 }
  0x16   :  { %v47_v18 = vmul.f32 %v81_v7, %v46_v14 }
  0x19   :  { %v83_v17 = vpop.eup %82 }
  0x1a   :  { %v85_v19 = vpop.eup %84  ;;  %v35_v20 = vmul.f32 0.6931472, %v83_v17 }
  0x1b   :  { %v44_v21 = vmul.f32 0.6931472, %v85_v19 }
  0x1c   :  { %v41_v22 = vsel %vm40_vm0, %v38_v16, %v35_v20 }
  0x1d   :  { %v51_v23 = vsel %vm25_vm1, %v23_v0, %v41_v22  ;;  %v50_v24 = vsel %vm49_vm2, %v47_v18, %v44_v21 }
  0x1e   :  { %86 = vtanh.f32 %v51_v23  ;;  %v52_v25 = vsel %vm26_vm3, %v24_v1, %v50_v24 }
  0x1f   :  { %88 = vtanh.f32 %v52_v25 }
  0x24   :  { %v87_v26 = vpop.eup %86 }
  0x25   :  { %v89_v27 = vpop.eup %88  ;;  %v55_v28 = vmul.f32 %v87_v26, %v23_v0 }
  0x26   :  { %v56_v29 = vmul.f32 %v89_v27, %v24_v1 }
  0x27   :  { %57 = vst [vmem:[#allocation5] sm:$0xff] %v55_v28 }
  0x28   :  { %58 = vst [vmem:[#allocation5 + $0x8] sm:$0xff] %v56_v29 }
  0x29   :  { %69 = dma.vmem_to_hbm [thread:$0]  %s65_s11, 256, %s67_s14, [#allocation4]  }
  0x2a   :  { %140 = dma.done.wait [#allocation4], 256  }
  0x2b   :  { %141 = vsyncadd [#allocation4], 4294967040 }
  0x2c   :  { %74 = vsyncpa [#allocation3], 1 }
  0x2d   :  { %75 = vsyncpa [#allocation4], 1 }

</bundles_post_ra>
